<compile_context>
chip_gen: v6e
topology: v6e:2x2x1
jax: 0.10.0
libtpu: 0.0.40
codegen_flags: <defaults>
</compile_context>

<pallas_src>
import jax
import jax.numpy as jnp
import numpy as np
from jax.experimental import pallas as pl
from jax.experimental.pallas import tpu as pltpu


def _round_up(x: int, m: int) -> int:
    return ((x + m - 1) // m) * m


def _odeg_kernel(t_ref, x_ref, adjt_ref, w1t_ref, b1_ref, w2t_ref, b2_ref, o_ref):
    # One batch element, transposed (features, nodes) layout, N on lanes.
    #   t_ref:    (1,)       SMEM time scalar
    #   x_ref:    (F, Np)    f32 activations (lane-dense, zero-padded nodes)
    #   adjt_ref: (Np, Np)   adj^T in matmul dtype (bf16 default), resident VMEM
    #   w1t_ref:  (H, F)     W1^T ; b1_ref: (H, 1) f32
    #   w2t_ref:  (F, H)     W2^T ; b2_ref: (F, 1) f32
    #   o_ref:    (F, Np)    f32 output block
    t = t_ref[0]
    x = x_ref[...]                       # f32, kept for the Euler update
    adjt = adjt_ref[...]
    mm = adjt.dtype                      # matmul operand dtype (bf16 or f32)

    # ---- layer 1:  h1 = relu( adj @ (x W1 + b1) )   (right-mult by adj^T here)
    t1 = jnp.dot(w1t_ref[...], x.astype(mm),
                 preferred_element_type=jnp.float32) + b1_ref[...]          # (H, Np) f32
    h1 = jnp.maximum(
        jnp.dot(t1.astype(mm), adjt, preferred_element_type=jnp.float32), 0.0)

    # ---- layer 2:  h2 = relu( adj @ (h1 W2 + b2) )
    t2 = jnp.dot(w2t_ref[...], h1.astype(mm),
                 preferred_element_type=jnp.float32) + b2_ref[...]          # (F, Np) f32
    h2 = jnp.maximum(
        jnp.dot(t2.astype(mm), adjt, preferred_element_type=jnp.float32), 0.0)

    # ---- single Euler step over [0, time] + final ReLU (all f32 VPU math)
    o_ref[...] = jnp.maximum(x + t * h2, 0.0)


def make_odeg_params(adj, w1, b1, w2, b2, *, matmul_dtype=jnp.bfloat16,
                     lane_multiple=128):
    """One-time parameter prep (reuse the result across forward calls).

    lane_multiple: 128 is always safe; 256 preferred on v6e/v7x (2x256^2 MXU).
    """
    n = adj.shape[0]
    n_pad = _round_up(n, lane_multiple)
    adj_t = jnp.zeros((n_pad, n_pad), jnp.float32)
    adj_t = adj_t.at[:n, :n].set(jnp.asarray(adj).T).astype(matmul_dtype)
    return {
        "adjT": adj_t,                                            # (Np, Np)
        "w1T": jnp.asarray(w1).T.astype(matmul_dtype),            # (H, F)
        "b1": jnp.asarray(b1).reshape(-1, 1).astype(jnp.float32), # (H, 1)
        "w2T": jnp.asarray(w2).T.astype(matmul_dtype),            # (F, H)
        "b2": jnp.asarray(b2).reshape(-1, 1).astype(jnp.float32), # (F, 1)
        "n": n,
        "n_pad": n_pad,
    }


def odeg_forward(x, params, *, time=6.0):
    """x: (B, N, 1, F) float32 -> (B, N, 1, F) float32 (ODE block forward)."""
    B, N, one, F = x.shape
    assert one == 1
    assert N == params["n"]
    n_pad = params["n_pad"]
    H = params["w1T"].shape[0]

    # Transposed, lane-dense activation layout (cheap XLA transpose + pad).
    x_t = jnp.transpose(x.reshape(B, N, F), (0, 2, 1))            # (B, F, N)
    if n_pad != N:
        x_t = jnp.pad(x_t, ((0, 0), (0, 0), (0, n_pad - N)))
    t_arr = jnp.asarray([time], dtype=jnp.float32)                # SMEM scalar

    # Explicit VMEM budget: adj^T + weights resident once, x/out double-buffered.
    mm_bytes = params["adjT"].dtype.itemsize
    need = (n_pad * n_pad * mm_bytes
            + 2 * H * F * mm_bytes
            + (H + F) * 4
            + 2 * 2 * F * n_pad * 4)
    vmem_limit = int(max(16 << 20, min(2 * need + (4 << 20), 128 << 20)))

    out_t = pl.pallas_call(
        _odeg_kernel,
        out_shape=jax.ShapeDtypeStruct((B, F, n_pad), jnp.float32),
        grid_spec=pltpu.PrefetchScalarGridSpec(
            num_scalar_prefetch=0,
            grid=(B,),
            in_specs=[
                pl.BlockSpec(memory_space=pltpu.MemorySpace.SMEM),     # time
                pl.BlockSpec((None, F, n_pad), lambda b: (b, 0, 0)),   # x, per-batch block
                pl.BlockSpec(memory_space=pltpu.MemorySpace.VMEM),     # adj^T (whole, single copy)
                pl.BlockSpec(memory_space=pltpu.MemorySpace.VMEM),     # W1^T
                pl.BlockSpec(memory_space=pltpu.MemorySpace.VMEM),     # b1
                pl.BlockSpec(memory_space=pltpu.MemorySpace.VMEM),     # W2^T
                pl.BlockSpec(memory_space=pltpu.MemorySpace.VMEM),     # b2
            ],
            out_specs=pl.BlockSpec((None, F, n_pad), lambda b: (b, 0, 0)),
        ),
        compiler_params=pltpu.CompilerParams(
            dimension_semantics=("parallel",),   # per-batch axis: megacore-shards on v7x
            vmem_limit_bytes=vmem_limit,
        ),
    )(t_arr, x_t, params["adjT"], params["w1T"], params["b1"],
      params["w2T"], params["b2"])

    # Un-pad and return in the module's (B, N, 1, F) layout.
    return jnp.transpose(out_t[:, :, :N], (0, 2, 1)).reshape(B, N, 1, F)


def _reference(x, adj, w1, b1, w2, b2, time=6.0):
    """Pure-JAX reference of the same forward pass (original op order, f32)."""
    B, N, _, F = x.shape
    xf = x.reshape(B, N, F)
    h1 = jnp.maximum(jnp.einsum("nm,bmh->bnh", adj, xf @ w1 + b1), 0.0)
    h2 = jnp.maximum(jnp.einsum("nm,bmf->bnf", adj, h1 @ w2 + b2), 0.0)
    z = xf + time * h2
    return jnp.maximum(z, 0.0).reshape(B, N, 1, F)


def _process_graph(a):
    """Row-normalize (A + I) like GCN_test.process_graph."""
    n = a.shape[0]
    a = a + jnp.eye(n, dtype=jnp.float32)
    deg = jnp.sum(a, axis=1)
    inv = jnp.where(deg == 0.0, 0.0, 1.0 / deg)
    return jnp.diag(inv) @ a


if __name__ == "__main__":
    key = jax.random.PRNGKey(0)
    B, N, F, HID = 2, 16, 6, 32   # feature dim fixed to 6 by nn.Linear(6, hid_c)
    TIME = 6.0

    k_x, k_a, k_w1, k_b1, k_w2, k_b2 = jax.random.split(key, 6)

    # input: (B, N, 1, 6)  (matches GCN_test's view(B, N, -1) -> 6 features)
    x = jax.random.normal(k_x, (B, N, 1, F), dtype=jnp.float32)

    # deterministic adjacency, normalized as D^-1 (A + I)
    a_raw = (jax.random.uniform(k_a, (N, N)) > 0.5).astype(jnp.float32)
    adj = _process_graph(a_raw)

    # deterministic parameter init (synthetic; shapes per nn.Linear(6,hid)/(hid,6))
    w1 = jax.random.normal(k_w1, (F, HID), dtype=jnp.float32) * 0.2
    b1 = jax.random.normal(k_b1, (HID,), dtype=jnp.float32) * 0.1
    w2 = jax.random.normal(k_w2, (HID, F), dtype=jnp.float32) * 0.2
    b2 = jax.random.normal(k_b2, (F,), dtype=jnp.float32) * 0.1

    # TODO(synk): GCN_test defines dropout / input_layer / output_layer but never
    # uses them in forward; dropout in eval mode is identity -> omitted.
    # TODO(synk): the Transformer / FusionWeight / encoder / decoder stages of
    # ODEG_static have no definitions in the provided code; this kernel covers
    # the ODE block (single Euler step of GCN_test) only.

    ref = _reference(x, adj, w1, b1, w2, b2, time=TIME)

    # f32 matmul path: exact structural validation of the lane-dense layout.
    params_f32 = make_odeg_params(adj, w1, b1, w2, b2, matmul_dtype=jnp.float32)
    out_f32 = jax.block_until_ready(odeg_forward(x, params_f32, time=TIME))
    np.testing.assert_allclose(np.asarray(out_f32), np.asarray(ref),
                               rtol=1e-4, atol=1e-5)

    # default bf16-matmul / f32-accumulate / f32-elementwise path (perf config).
    params_bf16 = make_odeg_params(adj, w1, b1, w2, b2, matmul_dtype=jnp.bfloat16)
    out_bf16 = jax.block_until_ready(odeg_forward(x, params_bf16, time=TIME))
    np.testing.assert_allclose(np.asarray(out_bf16), np.asarray(ref),
                               rtol=5e-2, atol=5e-2)

    print("KERNEL_OK")
</pallas_src>

<mosaic_0001>
module attributes {stable_mosaic.version = 11 : i64} {
  func.func @_odeg_kernel(%arg0: i32, %arg1: memref<1xf32, #tpu.memory_space<smem>>, %arg2: memref<1x6x128xf32, #tpu.memory_space<vmem>>, %arg3: memref<128x128xf32, #tpu.memory_space<vmem>>, %arg4: memref<32x6xf32, #tpu.memory_space<vmem>>, %arg5: memref<32x1xf32, #tpu.memory_space<vmem>>, %arg6: memref<6x32xf32, #tpu.memory_space<vmem>>, %arg7: memref<6x1xf32, #tpu.memory_space<vmem>>, %arg8: memref<1x6x128xf32, #tpu.memory_space<vmem>>) attributes {dimension_semantics = [#tpu.dimension_semantics<parallel>], iteration_bounds = array<i64: 2>, scalar_prefetch = 0 : i64, scratch_operands = 0 : i64, tpu.core_type = #tpu.core_type<tc>, window_params = [{transform_indices = @transform_0, window_bounds = array<i64: 1>}, {transform_indices = @transform_1, window_bounds = array<i64: 1, 6, 128>}, {pipeline_mode = #tpu.pipeline_mode<synchronous>, transform_indices = @transform_2, window_bounds = array<i64: 128, 128>}, {pipeline_mode = #tpu.pipeline_mode<synchronous>, transform_indices = @transform_3, window_bounds = array<i64: 32, 6>}, {pipeline_mode = #tpu.pipeline_mode<synchronous>, transform_indices = @transform_4, window_bounds = array<i64: 32, 1>}, {pipeline_mode = #tpu.pipeline_mode<synchronous>, transform_indices = @transform_5, window_bounds = array<i64: 6, 32>}, {pipeline_mode = #tpu.pipeline_mode<synchronous>, transform_indices = @transform_6, window_bounds = array<i64: 6, 1>}, {transform_indices = @transform_7, window_bounds = array<i64: 1, 6, 128>}]} {
    %c0 = arith.constant 0 : index
    %0 = memref.load %arg1[%c0] : memref<1xf32, #tpu.memory_space<smem>>
    %c0_0 = arith.constant 0 : index
    %c0_1 = arith.constant 0 : index
    %c0_2 = arith.constant 0 : index
    %1 = vector.load %arg2[%c0_0, %c0_1, %c0_2] : memref<1x6x128xf32, #tpu.memory_space<vmem>>, vector<1x6x128xf32>
    %2 = vector.shape_cast %1 : vector<1x6x128xf32> to vector<6x128xf32>
    %c0_3 = arith.constant 0 : index
    %c0_4 = arith.constant 0 : index
    %3 = vector.load %arg3[%c0_3, %c0_4] : memref<128x128xf32, #tpu.memory_space<vmem>>, vector<128x128xf32>
    %c0_5 = arith.constant 0 : index
    %c0_6 = arith.constant 0 : index
    %4 = vector.load %arg4[%c0_5, %c0_6] : memref<32x6xf32, #tpu.memory_space<vmem>>, vector<32x6xf32>
    %cst = arith.constant dense<0.000000e+00> : vector<32x128xf32>
    %5 = tpu.matmul %4, %2, %cst {dimension_numbers = #tpu.dot_dimension_numbers<[1], [0], [0], [1], [0, 0, 1, 1], [], []>} : vector<32x6xf32>, vector<6x128xf32>, vector<32x128xf32> -> vector<32x128xf32>
    %c0_7 = arith.constant 0 : index
    %c0_8 = arith.constant 0 : index
    %6 = vector.load %arg5[%c0_7, %c0_8] : memref<32x1xf32, #tpu.memory_space<vmem>>, vector<32x1xf32>
    %7 = vector.broadcast %6 : vector<32x1xf32> to vector<32x128xf32>
    %8 = arith.addf %5, %7 : vector<32x128xf32>
    %cst_9 = arith.constant dense<0.000000e+00> : vector<32x128xf32>
    %9 = tpu.matmul %8, %3, %cst_9 {dimension_numbers = #tpu.dot_dimension_numbers<[1], [0], [0], [1], [0, 0, 1, 1], [], []>} : vector<32x128xf32>, vector<128x128xf32>, vector<32x128xf32> -> vector<32x128xf32>
    %cst_10 = arith.constant 0.000000e+00 : f32
    %10 = vector.broadcast %cst_10 : f32 to vector<32x128xf32>
    %11 = arith.maximumf %9, %10 : vector<32x128xf32>
    %c0_11 = arith.constant 0 : index
    %c0_12 = arith.constant 0 : index
    %12 = vector.load %arg6[%c0_11, %c0_12] : memref<6x32xf32, #tpu.memory_space<vmem>>, vector<6x32xf32>
    %cst_13 = arith.constant dense<0.000000e+00> : vector<6x128xf32>
    %13 = tpu.matmul %12, %11, %cst_13 {dimension_numbers = #tpu.dot_dimension_numbers<[1], [0], [0], [1], [0, 0, 1, 1], [], []>} : vector<6x32xf32>, vector<32x128xf32>, vector<6x128xf32> -> vector<6x128xf32>
    %c0_14 = arith.constant 0 : index
    %c0_15 = arith.constant 0 : index
    %14 = vector.load %arg7[%c0_14, %c0_15] : memref<6x1xf32, #tpu.memory_space<vmem>>, vector<6x1xf32>
    %15 = vector.broadcast %14 : vector<6x1xf32> to vector<6x128xf32>
    %16 = arith.addf %13, %15 : vector<6x128xf32>
    %cst_16 = arith.constant dense<0.000000e+00> : vector<6x128xf32>
    %17 = tpu.matmul %16, %3, %cst_16 {dimension_numbers = #tpu.dot_dimension_numbers<[1], [0], [0], [1], [0, 0, 1, 1], [], []>} : vector<6x128xf32>, vector<128x128xf32>, vector<6x128xf32> -> vector<6x128xf32>
    %cst_17 = arith.constant 0.000000e+00 : f32
    %18 = vector.broadcast %cst_17 : f32 to vector<6x128xf32>
    %19 = arith.maximumf %17, %18 : vector<6x128xf32>
    %20 = vector.broadcast %0 : f32 to vector<6x128xf32>
    %21 = arith.mulf %20, %19 : vector<6x128xf32>
    %22 = arith.addf %2, %21 : vector<6x128xf32>
    %cst_18 = arith.constant 0.000000e+00 : f32
    %23 = vector.broadcast %cst_18 : f32 to vector<6x128xf32>
    %24 = arith.maximumf %22, %23 : vector<6x128xf32>
    %c0_19 = arith.constant 0 : index
    %c0_20 = arith.constant 0 : index
    %c0_21 = arith.constant 0 : index
    %25 = vector.load %arg8[%c0_19, %c0_20, %c0_21] : memref<1x6x128xf32, #tpu.memory_space<vmem>>, vector<1x6x128xf32>
    %26 = vector.shape_cast %25 : vector<1x6x128xf32> to vector<6x128xf32>
    %27 = vector.shape_cast %24 : vector<6x128xf32> to vector<1x6x128xf32>
    tpu.vector_store %arg8[%c0_19, %c0_20, %c0_21], %27 {strides = array<i32>} : memref<1x6x128xf32, #tpu.memory_space<vmem>>, vector<1x6x128xf32>,
    return
  }
  func.func @transform_0(%arg0: i32) -> i32 {
    %c0_i32 = arith.constant 0 : i32
    %c0_i32_0 = arith.constant 0 : i32
    return %c0_i32 : i32
  }
  func.func @transform_1(%arg0: i32) -> (i32, i32, i32) {
    %c0_i32 = arith.constant 0 : i32
    %c0_i32_0 = arith.constant 0 : i32
    %c0_i32_1 = arith.constant 0 : i32
    return %arg0, %c0_i32, %c0_i32_0 : i32, i32, i32
  }
  func.func @transform_2(%arg0: i32) -> (i32, i32) {
    %c0_i32 = arith.constant 0 : i32
    %c0_i32_0 = arith.constant 0 : i32
    %c0_i32_1 = arith.constant 0 : i32
    return %c0_i32, %c0_i32_0 : i32, i32
  }
  func.func @transform_3(%arg0: i32) -> (i32, i32) {
    %c0_i32 = arith.constant 0 : i32
    %c0_i32_0 = arith.constant 0 : i32
    %c0_i32_1 = arith.constant 0 : i32
    return %c0_i32, %c0_i32_0 : i32, i32
  }
  func.func @transform_4(%arg0: i32) -> (i32, i32) {
    %c0_i32 = arith.constant 0 : i32
    %c0_i32_0 = arith.constant 0 : i32
    %c0_i32_1 = arith.constant 0 : i32
    return %c0_i32, %c0_i32_0 : i32, i32
  }
  func.func @transform_5(%arg0: i32) -> (i32, i32) {
    %c0_i32 = arith.constant 0 : i32
    %c0_i32_0 = arith.constant 0 : i32
    %c0_i32_1 = arith.constant 0 : i32
    return %c0_i32, %c0_i32_0 : i32, i32
  }
  func.func @transform_6(%arg0: i32) -> (i32, i32) {
    %c0_i32 = arith.constant 0 : i32
    %c0_i32_0 = arith.constant 0 : i32
    %c0_i32_1 = arith.constant 0 : i32
    return %c0_i32, %c0_i32_0 : i32, i32
  }
  func.func @transform_7(%arg0: i32) -> (i32, i32, i32) {
    %c0_i32 = arith.constant 0 : i32
    %c0_i32_0 = arith.constant 0 : i32
    %c0_i32_1 = arith.constant 0 : i32
    return %arg0, %c0_i32, %c0_i32_0 : i32, i32, i32
  }
}

</mosaic_0001>

<bundles_post_ra>
// kernel: tpu_custom_call.1
= control target key start
LH: loop header
LB: loop body
LE: loop exit
PB: predicated region body
PF: predicated region fallthrough
CT: control target
= control target key end

     0   :  { %s1185_s0 = inlined_call_operand.<no memory space> [shape: f32[1], index: 0, kind: input, shape index: {}]   ;;  %s1186_s1 = inlined_call_operand.vmem [shape: f32[2,6,128], index: 1, kind: input, shape index: {}]   ;;  %s1187_s2 = inlined_call_operand.hbm [shape: f32[128,128], index: 2, kind: input, shape index: {}]   ;;  %s1188_s3 = inlined_call_operand.vmem [shape: f32[32,6], index: 3, kind: input, shape index: {}]   ;;  %s1189_s4 = inlined_call_operand.vmem [shape: f32[32,1], index: 4, kind: input, shape index: {}]   ;;  %s1190_s5 = inlined_call_operand.vmem [shape: f32[6,32], index: 5, kind: input, shape index: {}]   ;;  %s1191_s6 = inlined_call_operand.vmem [shape: f32[6,1], index: 6, kind: input, shape index: {}]   ;;  %s1192_s7 = inlined_call_operand.vmem [shape: f32[2,6,128], index: 7, kind: output, shape index: {}]  }
   0x1   :  { %12 = sst [smem:[#allocation2]] %s1185_s0 }
   0x2   :  { %13 = vsyncpa [#allocation4], 0  ;;  %s1018_s26 = smov 0  }
   0x3 LB: > { %s1024_s27 = sadd.s32 4294967295, %s967_s26   ;;  %p751_p0 = scmp.ge.s32.totalorder %s967_s26, 1  ;;  %s967_s26 = sphi %s1018_s26, %s19_s26  }
   0x4   : > { %p202_p1 = scmp.lt.s32.totalorder %s967_s26, 3  ;;  %s969_s28 = smov [#allocation3]  }
   0x5   : > { %s217_s29 = sshll.u32 %s969_s28, 4  ;;  %p913_p3 = scmp.eq.s32.totalorder %s1024_s27, 0  ;;  %s218_s29 = int_to_ptr.vmem [resolvable:$true] %s217_s29 }
   0x6   : > { %p1028_p2 = pnand %p751_p0, %p202_p1  ;;  %s942_s30 = scalar_lea.vmem %s218_s29, 2048 }
   0x7   : > { %p943_p7 = scmp.ne.s32.totalorder %s218_s29, %s942_s30  ;;  %p950_p10 = scmp.lt.s32.totalorder %s218_s29, %s218_s29 }
   0x8   : > { %p909_p4 = pneg %p1028_p2  ;;  %p951_p11 = scmp.lt.s32.totalorder %s942_s30, %s942_s30 }
   0xa   : > { %p910_p5 = pnand %p913_p3, %p909_p4  ;;  %p952_p12 = por %p951_p11, %p950_p10 }
   0xc   : > { %p933_p6 = pneg %p910_p5 }
   0xe   : > { %p945_p8 = pnand %p943_p7, %p933_p6 }
  0x10   : > { %p946_p9 = pneg %p945_p8 }
  0x12   : > { %p953_p13 = pnand %p952_p12, %p946_p9 }
  0x14   : > { %956 = shalt.err (!%p953_p13)
}
  0x15   : > { %s970_s8 = smov 128   ;;  %s971_s9 = smov 8  }
  0x16   : > { %912 = dma.hbm_to_vmem [thread:$0]  (!%p910_p5), %s1187_s2, 2048, %s218_s29, [#allocation4], %s970_s8, %s970_s8, %s971_s9  }
  0x17   : > { %252 = sbr.rel (%p1028_p2) target bundleno = 838 (0x346), region = 48 }
  0x1c   : > { %962 = dma.done.wait (%p913_p3), [#allocation4], 2048  }
  0x1d   : > { %964 = vsyncadd (%p913_p3), [#allocation4], 4294965248  ;;  %p282_p0 = scmp.lt.s32.totalorder %s1024_s27, 1  ;;  %v972_v0 = vmov 0   ;;  %vm349_vm0 = vcmask 1045504   ;;  %vm336_vm1 = vcmask 48128  }
  0x1e   : > { %929 = vset.pattern.permute.xlu0 %v972_v0  ;;  %930 = vset.pattern.permute.xlu1 %v972_v0  ;;  %v308_v2 = vld [vmem:[%s1188_s3] sm:$0xff]  ;;  %v309_v3 = vld [vmem:[%s1188_s3 + $0x8] sm:$0xff]  ;;  %v310_v4 = vld [vmem:[%s1188_s3 + $0x10] sm:$0xff]  ;;  %v973_v39 = vmov 0.0   ;;  %vm974_vm2 = vmmov 0   ;;  %vm534_vm3 = vcmask 261120  }
  0x1f   : > { %s1195_s27 = smov (!%p282_p0, %s1024_s27), 1  ;;  %815 = vmatprep.mubr.msk.f32.mxu1 %vm336_vm1, %v308_v2  ;;  %v312_v5 = vld [vmem:[%s1189_s4] sm:$0xff]  ;;  %v314_v6 = vld [vmem:[%s1189_s4 + $0x10] sm:$0xff]  ;;  %v313_v7 = vld [vmem:[%s1189_s4 + $0x8] sm:$0xff]  ;;  %859 = vmatprep.subr.mxu0 %v973_v39 }
  0x20   : > { %s756_s12 = sshll.u32 %s1195_s27, 3  ;;  %318 = vperm.xlu0 %929, %v312_v5   ;;  %328 = vperm.xlu1 %930, %v314_v6   ;;  %v1080_v8 = vld [vmem:[#allocation3 + $0x78] sm:$0xff]  ;;  %v1082_v9 = vld [vmem:[#allocation3 + $0x70] sm:$0xff]  ;;  %v1094_v12 = vld [vmem:[#allocation3 + $0x68] sm:$0xff] }
  0x21   : > { %s285_s15 = scalar_lea.vmem %s1186_s1, %s756_s12  ;;  %v311_v10 = vld [vmem:[%s1188_s3 + $0x18] sm:$0xff]  ;;  %v528_v13 = vld [vmem:[%s1191_s6] sm:$0x3f]  ;;  %v1109_v16 = vld [vmem:[#allocation3 + $0x50] sm:$0xff]  ;;  %867 = vmatprep.mubr.msk.f32.mxu0 %vm974_vm2, %v973_v39  ;;  %s289_s18 = scalar_lea.vmem %s1192_s7, %s756_s12 }
  0x22   : > { %v1056_v1 = vld [vmem:[%s285_s15] sm:$0x3f]  ;;  %v315_v11 = vld [vmem:[%s1189_s4 + $0x18] sm:$0xff]  ;;  %v1113_v17 = vld [vmem:[#allocation3 + $0x48] sm:$0xff]  ;;  %s290_s15 = sld [smem:[#allocation2]] }
  0x23   : > { %813 = vmatprep.subr.msk.mxu1 %vm349_vm0, %v1056_v1  ;;  %v1101_v14 = vld [vmem:[#allocation3 + $0x60] sm:$0xff]  ;;  %v1105_v15 = vld [vmem:[#allocation3 + $0x58] sm:$0xff]  ;;  %v1125_v20 = vld [vmem:[#allocation3 + $0x30] sm:$0xff] }
  0x24   : > { %814 = vmatpush3.msk.msra.mxu1 %vm349_vm0, %v1056_v1  ;;  %323 = vperm.xlu0 %929, %v313_v7   ;;  %v1117_v18 = vld [vmem:[#allocation3 + $0x40] sm:$0xff]  ;;  %v1121_v19 = vld [vmem:[#allocation3 + $0x38] sm:$0xff]  ;;  %v1129_v21 = vld [vmem:[#allocation3 + $0x28] sm:$0xff] }
  0x25   : > { %816 = vmatmul.mubr.msk.f32.vlgmr.msra.gmra.mxu1 %vm336_vm1, %v309_v3  ;;  %821 = vmatprep.subr.mxu1 %v1080_v8  ;;  %v1133_v22 = vld [vmem:[#allocation3 + $0x20] sm:$0xff]  ;;  %v1137_v23 = vld [vmem:[#allocation3 + $0x18] sm:$0xff]  ;;  %v1143_v24 = vld [vmem:[#allocation3 + $0x10] sm:$0xff] }
  0x26   : > { %818 = vmatprep.mubr.msk.f32.mxu1 %vm336_vm1, %v310_v4  ;;  %822 = vmatpush3.msra.mxu1 %v1080_v8  ;;  %v1147_v25 = vld [vmem:[#allocation3 + $0x8] sm:$0xff]  ;;  %v1151_v26 = vld [vmem:[#allocation3] sm:$0xff] }
  0x27   : > { %823 = vmatprep.subr.mxu1 %v1082_v9  ;;  %333 = vperm.xlu1 %930, %v315_v11   ;;  %v527_v48 = vld [vmem:[%s1190_s5] sm:$0x3f] }
  0x28   : > { %824 = vmatpush3.msra.mxu1 %v1082_v9  ;;  %531 = vperm.xlu0 %929, %v528_v13   ;;  %v679_v54 = vstv %s290_s15 }
  0x29   : > { %819 = vmatmul.mubr.msk.f32.gmra.mxu1 %vm336_vm1, %v311_v10  ;;  %825 = vmatprep.subr.mxu1 %v1094_v12 }
  0x2a   : > { %826 = vmatpush3.msra.mxu1 %v1094_v12 }
  0x2b   : > { %827 = vmatprep.subr.mxu1 %v1101_v14 }
  0x2c   : > { %828 = vmatpush3.msra.mxu1 %v1101_v14 }
  0x2d   : > { %829 = vmatprep.subr.mxu1 %v1105_v15 }
  0x2e   : > { %830 = vmatpush3.msra.mxu1 %v1105_v15 }
  0x2f   : > { %831 = vmatprep.subr.mxu1 %v1109_v16 }
  0x30   : > { %832 = vmatpush3.msra.mxu1 %v1109_v16 }
  0x31   : > { %833 = vmatprep.subr.mxu1 %v1113_v17 }
  0x32   : > { %834 = vmatpush3.msra.mxu1 %v1113_v17 }
  0x33   : > { %835 = vmatprep.subr.mxu1 %v1117_v18 }
  0x34   : > { %836 = vmatpush3.msra.mxu1 %v1117_v18 }
  0x35   : > { %837 = vmatprep.subr.mxu1 %v1121_v19 }
  0x36   : > { %838 = vmatpush3.msra.mxu1 %v1121_v19 }
  0x37   : > { %839 = vmatprep.subr.mxu1 %v1125_v20 }
  0x38   : > { %840 = vmatpush3.msra.mxu1 %v1125_v20 }
  0x39   : > { %841 = vmatprep.subr.mxu1 %v1129_v21 }
  0x3a   : > { %842 = vmatpush3.msra.mxu1 %v1129_v21 }
  0x3b   : > { %843 = vmatprep.subr.mxu1 %v1133_v22 }
  0x3c   : > { %844 = vmatpush3.msra.mxu1 %v1133_v22 }
  0x3d   : > { %845 = vmatprep.subr.mxu1 %v1137_v23 }
  0x3e   : > { %846 = vmatpush3.msra.mxu1 %v1137_v23 }
  0x3f   : > { %847 = vmatprep.subr.mxu1 %v1143_v24 }
  0x40   : > { %848 = vmatpush3.msra.mxu1 %v1143_v24 }
  0x41   : > { %849 = vmatprep.subr.mxu1 %v1147_v25 }
  0x42   : > { %850 = vmatpush3.msra.mxu1 %v1147_v25 }
  0x43   : > { %851 = vmatprep.subr.mxu1 %v1151_v26 }
  0x44   : > { %852 = vmatpush3.msra.mxu1 %v1151_v26 }
  0x9b   : > { %v319_v27 = vpop.permute.xlu0 %318  ;;  %v329_v28 = vpop.permute.xlu1 %328 }
  0x9f   : > { %v324_v31 = vpop.permute.xlu0 %323 }
  0xa2   : > { %v334_v35 = vpop.permute.xlu1 %333 }
  0xa3   : > { %v532_v49 = vpop.permute.xlu0 %531 }
  0xe5   : > { %v817_v29 = vpop.f32.mrf.mxu1 }
  0xe6   : > { %v425_v33 = vadd.f32 %v817_v29, %v324_v31 }
  0xe7   : > { %v419_v30 = vpop.f32.mrf.mxu1 }
  0xe8   : > { %v420_v32 = vadd.f32 %v419_v30, %v319_v27 }
  0xe9   : > { %v820_v34 = vpop.f32.mrf.mxu1 }
  0xea   : > { %853 = vmatprep.mubr.f32.mxu1 %v420_v32  ;;  %v435_v38 = vadd.f32 %v820_v34, %v334_v35 }
  0xeb   : > { %v429_v36 = vpop.f32.mrf.mxu1  ;;  %854 = vmatmul.mubr.f32.vlgmr.msra.gmra.mxu1 %v425_v33 }
  0xec   : > { %v430_v37 = vadd.f32 %v429_v36, %v329_v28 }
  0xee   : > { %856 = vmatprep.mubr.f32.mxu1 %v430_v37 }
  0xef   : > { %857 = vmatmul.mubr.f32.gmra.mxu1 %v435_v38 }
 0x1ab   : > { %v855_v40 = vpop.f32.mrf.mxu1 }
 0x1ac   : > { %v524_v46 = vmax.f32 %v855_v40, 0.0 }
 0x1ad   : > { %v504_v41 = vpop.f32.mrf.mxu1 }
 0x1ae   : > { %v523_v47 = vmax.f32 %v504_v41, 0.0 }
 0x1af   : > { %v858_v42 = vpop.f32.mrf.mxu1 }
 0x1b0   : > { %v526_v43 = vmax.f32 %v858_v42, 0.0 }
 0x1b1   : > { %v514_v44 = vpop.f32.mrf.mxu1 }
 0x1b2   : > { %v525_v45 = vmax.f32 %v514_v44, 0.0  ;;  %860 = vmatpush3.msra.mxu0 %v526_v43 }
 0x1b3   : > { %861 = vmatprep.subr.mxu0 %v973_v39 }
 0x1b4   : > { %862 = vmatpush3.msra.mxu0 %v525_v45 }
 0x1b5   : > { %863 = vmatprep.subr.mxu0 %v973_v39 }
 0x1b6   : > { %864 = vmatpush3.msra.mxu0 %v524_v46 }
 0x1b7   : > { %865 = vmatprep.subr.mxu0 %v973_v39 }
 0x1b8   : > { %866 = vmatpush3.msra.mxu0 %v523_v47 }
 0x1b9   : > { %868 = vmatmul.mubr.msk.f32.vlgmr.msra.gmra.mxu0 %vm534_vm3, %v527_v48  ;;  %870 = vmatprep.subr.mxu0 %v973_v39 }
 0x1ba   : > { %871 = vmatpush3.msra.mxu0 %v1080_v8  ;;  %902 = vmatprep.mubr.msk.f32.mxu0 %vm974_vm2, %v973_v39 }
 0x1bb   : > { %872 = vmatprep.subr.mxu0 %v973_v39 }
 0x1bc   : > { %873 = vmatpush3.msra.mxu0 %v1082_v9 }
 0x1bd   : > { %874 = vmatprep.subr.mxu0 %v973_v39 }
 0x1be   : > { %875 = vmatpush3.msra.mxu0 %v1094_v12 }
 0x1bf   : > { %876 = vmatprep.subr.mxu0 %v973_v39 }
 0x1c0   : > { %877 = vmatpush3.msra.mxu0 %v1101_v14 }
 0x1c1   : > { %878 = vmatprep.subr.mxu0 %v973_v39 }
 0x1c2   : > { %879 = vmatpush3.msra.mxu0 %v1105_v15 }
 0x1c3   : > { %880 = vmatprep.subr.mxu0 %v973_v39 }
 0x1c4   : > { %881 = vmatpush3.msra.mxu0 %v1109_v16 }
 0x1c5   : > { %882 = vmatprep.subr.mxu0 %v973_v39 }
 0x1c6   : > { %883 = vmatpush3.msra.mxu0 %v1113_v17 }
 0x1c7   : > { %884 = vmatprep.subr.mxu0 %v973_v39 }
 0x1c8   : > { %885 = vmatpush3.msra.mxu0 %v1117_v18 }
 0x1c9   : > { %886 = vmatprep.subr.mxu0 %v973_v39 }
 0x1ca   : > { %887 = vmatpush3.msra.mxu0 %v1121_v19 }
 0x1cb   : > { %888 = vmatprep.subr.mxu0 %v973_v39 }
 0x1cc   : > { %889 = vmatpush3.msra.mxu0 %v1125_v20 }
 0x1cd   : > { %890 = vmatprep.subr.mxu0 %v973_v39 }
 0x1ce   : > { %891 = vmatpush3.msra.mxu0 %v1129_v21 }
 0x1cf   : > { %892 = vmatprep.subr.mxu0 %v973_v39 }
 0x1d0   : > { %893 = vmatpush3.msra.mxu0 %v1133_v22 }
 0x1d1   : > { %894 = vmatprep.subr.mxu0 %v973_v39 }
 0x1d2   : > { %895 = vmatpush3.msra.mxu0 %v1137_v23 }
 0x1d3   : > { %896 = vmatprep.subr.mxu0 %v973_v39 }
 0x1d4   : > { %897 = vmatpush3.msra.mxu0 %v1143_v24 }
 0x1d5   : > { %898 = vmatprep.subr.mxu0 %v973_v39 }
 0x1d6   : > { %899 = vmatpush3.msra.mxu0 %v1147_v25 }
 0x1d7   : > { %900 = vmatprep.subr.mxu0 %v973_v39 }
 0x1d8   : > { %901 = vmatpush3.msra.mxu0 %v1151_v26 }
 0x279   : > { %v604_v50 = vpop.f32.mrf.mxu0 }
 0x27a   : > { %v605_v51 = vadd.f32 %v604_v50, %v532_v49 }
 0x27b   : > { %v869_v52 = vpop.f32.mrf.mxu0 }
 0x27c   : > { %903 = vmatmul.mubr.f32.vlgmr.msra.gmra.mxu0 %v605_v51 }
 0x33c   : > { %v674_v53 = vpop.f32.mrf.mxu0 }
 0x33d   : > { %v678_v55 = vmax.f32 %v674_v53, 0.0 }
 0x33e   : > { %v904_v56 = vpop.f32.mrf.mxu0 }
 0x33f   : > { %v680_v57 = vmul.f32 %v679_v54, %v678_v55 }
 0x341   : > { %v681_v58 = vadd.f32 %v680_v57, %v1056_v1 }
 0x343   : > { %v682_v59 = vmax.f32 %v681_v58, 0.0 }
 0x345   : > { %683 = vst [vmem:[%s289_s18] sm:$0x3f] %v682_v59 }
 0x346 PF: > { %s19_s26 = sadd.s32 1, %s967_s26  }
 0x347   : > { %p16_p1 = scmp.ge.s32.totalorder %s19_s26, 4  }
 0x349   :  { %18 = sbr.rel (!%p16_p1) target bundleno = 3 (0x3), region = 83 }
 0x34e   :  { %703 = vsyncpa [#allocation4], 1 }
 0x34f   :  { %705 = vsyncpa [#allocation4 + $0x1], 1 }

</bundles_post_ra>
